<compile_context>
chip_gen: v6e
topology: v6e:2x2x1
jax: 0.10.0
libtpu: 0.0.40
codegen_flags: <defaults>
</compile_context>

<pallas_src>
import functools

import jax
import jax.numpy as jnp
from jax.experimental import pallas as pl
from jax.experimental.pallas import tpu as pltpu


# ----------------------------------------------------------------------------------
# Stage 1: input-path convolution, hoisted off the serial path (fully parallel grid).
# ----------------------------------------------------------------------------------
def _xconv_kernel(x_ref, wx_ref, b_ref, out_ref, *, L, K):
    """conv_x = sum_k shift(x, k - pad) @ Wx[k] + bias for one (T_BLK, B_BLK) tile."""
    TB, BB, Lp, Cin = x_ref.shape          # Lp = L + K - 1 (halo-padded in wrapper)
    Co4 = out_ref.shape[-1]

    xb = x_ref[...]                        # (TB, BB, Lp, Cin)   compute dtype
    wx = wx_ref[...]                       # (K, Cin, 4Co)       compute dtype
    acc = None
    for k in range(K):                     # static tap loop; halo slice, no concat
        xs = xb[:, :, k:k + L, :].reshape(TB * BB * L, Cin)
        term = jnp.dot(xs, wx[k], preferred_element_type=jnp.float32)
        acc = term if acc is None else acc + term
    acc = acc + b_ref[...].astype(jnp.float32)           # (1, 4Co) broadcast
    out_ref[...] = acc.reshape(TB, BB, L, Co4).astype(out_ref.dtype)


# ----------------------------------------------------------------------------------
# Stage 2: sequential recurrence over time (T-blocked), parallel over batch tiles.
# ----------------------------------------------------------------------------------
def _recurrent_kernel(cx_ref, wh_ref, peep_ref, out_ref, h_pad_ref, c_ref, *,
                      activation, L, K, t_blk):
    """T_BLK timesteps of the ConvLSTM recurrence for one batch tile."""
    tb = pl.program_id(1)

    @pl.when(tb == 0)                      # new batch tile -> reset carried state
    def _():
        h_pad_ref[...] = jnp.zeros_like(h_pad_ref)   # halo rows stay 0 forever
        c_ref[...] = jnp.zeros_like(c_ref)

    BB = h_pad_ref.shape[0]
    Co = c_ref.shape[-1]
    pad = (K - 1) // 2
    act = jnp.tanh if activation == "tanh" else (lambda v: jnp.maximum(v, 0.0))

    wh = wh_ref[...]                       # (K, Co, 4Co)  compute dtype (loop-invariant)
    w_ci = peep_ref[0]                     # (BB*L, Co)    f32, pre-broadcast in wrapper
    w_cf = peep_ref[1]
    w_co = peep_ref[2]

    def step(t, carry):
        c_prev = c_ref[...]                # (BB*L, Co)    f32
        hp = h_pad_ref[...]                # (BB, L+K-1, Co) f32, zero halo

        # Start from the precomputed x-path conv (+bias); add the K shifted H matmuls.
        acc = cx_ref[t].reshape(BB * L, 4 * Co)
        for k in range(K):                 # static tap loop; halo slice, no concat
            hs = hp[:, k:k + L, :].reshape(BB * L, Co).astype(wh.dtype)
            acc = acc + jnp.dot(hs, wh[k], preferred_element_type=jnp.float32)

        # torch.chunk order: i, f, C(=g), o ; gate math stays f32 in packed layout.
        i_g = jax.nn.sigmoid(acc[:, 0 * Co:1 * Co] + w_ci * c_prev)
        f_g = jax.nn.sigmoid(acc[:, 1 * Co:2 * Co] + w_cf * c_prev)
        c_new = f_g * c_prev + i_g * act(acc[:, 2 * Co:3 * Co])
        o_g = jax.nn.sigmoid(acc[:, 3 * Co:4 * Co] + w_co * c_new)
        h_new = o_g * act(c_new)

        c_ref[...] = c_new
        h_pad_ref[:, pad:pad + L, :] = h_new.reshape(BB, L, Co)
        out_ref[t] = h_new.reshape(BB, L, Co).astype(out_ref.dtype)
        return carry

    jax.lax.fori_loop(0, t_blk, step, 0, unroll=True)


# ----------------------------------------------------------------------------------
# Wrapper
# ----------------------------------------------------------------------------------
def conv_lstm_1d_pallas(x, params, *, activation="tanh", t_blk=8, b_blk=1,
                        compute_dtype=jnp.bfloat16):
    """x: (B, C_in, T, L, 1) float32 (PyTorch layout). Returns (B, C_out, T, L, 1)."""
    B, Cin, T, L, W = x.shape
    assert W == 1, "1-D ConvLSTM: trailing width axis must be a singleton"
    w, b = params["conv_w"], params["conv_b"]                       # (4Co, Cin+Co, K), (4Co,)
    wci, wcf, wco = params["w_ci"], params["w_cf"], params["w_co"]  # (Co, L)
    Co4, CinCo, K = w.shape
    Co = Co4 // 4
    assert CinCo == Cin + Co
    assert K % 2 == 1, "'same' Conv1d padding of the reference requires odd kernel size"
    assert B % b_blk == 0
    pad = (K - 1) // 2

    t_blk = max(1, min(t_blk, T))
    n_tb = pl.cdiv(T, t_blk)
    T_pad = n_tb * t_blk
    n_bb = B // b_blk
    Lp = L + K - 1

    # ---- plain-JAX glue: layout + dtype prep (runs once, off the serial path) ----
    x_tl = jnp.transpose(x[..., 0], (2, 0, 3, 1))                   # (T, B, L, Cin)
    if T_pad != T:
        x_tl = jnp.pad(x_tl, ((0, T_pad - T), (0, 0), (0, 0), (0, 0)))
    # zero halo along L so every conv tap inside the kernel is a static slice.
    x_halo = jnp.pad(x_tl, ((0, 0), (0, 0), (pad, pad), (0, 0))).astype(compute_dtype)

    wx = jnp.transpose(w[:, :Cin, :], (2, 1, 0)).astype(compute_dtype)   # (K, Cin, 4Co)
    wh = jnp.transpose(w[:, Cin:, :], (2, 1, 0)).astype(compute_dtype)   # (K, Co, 4Co)
    b2 = b.reshape(1, 4 * Co).astype(jnp.float32)

    # Peephole Hadamard weights, pre-broadcast to the packed (b_blk*L, Co) layout.
    peep = jnp.stack([wci.T, wcf.T, wco.T]).astype(jnp.float32)          # (3, L, Co)
    peep = jnp.broadcast_to(peep[:, None], (3, b_blk, L, Co)).reshape(3, b_blk * L, Co)

    # ---- stage 1: hoisted input conv, parallel over (time blocks, batch tiles) ----
    conv_x = pl.pallas_call(
        functools.partial(_xconv_kernel, L=L, K=K),
        out_shape=jax.ShapeDtypeStruct((T_pad, B, L, 4 * Co), jnp.float32),
        grid_spec=pltpu.PrefetchScalarGridSpec(
            num_scalar_prefetch=0,
            grid=(n_tb, n_bb),
            in_specs=[
                pl.BlockSpec((t_blk, b_blk, Lp, Cin), lambda ti, bi: (ti, bi, 0, 0)),
                pl.BlockSpec((K, Cin, 4 * Co), lambda ti, bi: (0, 0, 0)),
                pl.BlockSpec((1, 4 * Co), lambda ti, bi: (0, 0)),
            ],
            out_specs=pl.BlockSpec((t_blk, b_blk, L, 4 * Co),
                                   lambda ti, bi: (ti, bi, 0, 0)),
        ),
        compiler_params=pltpu.CompilerParams(
            dimension_semantics=("parallel", "parallel")),
    )(x_halo, wx, b2)

    # ---- stage 2: recurrence; batch tiles parallel, time blocks sequential ----
    rec_kernel = functools.partial(_recurrent_kernel, activation=activation,
                                   L=L, K=K, t_blk=t_blk)
    out = pl.pallas_call(
        rec_kernel,
        out_shape=jax.ShapeDtypeStruct((T_pad, B, L, Co), x.dtype),
        grid_spec=pltpu.PrefetchScalarGridSpec(
            num_scalar_prefetch=0,
            grid=(n_bb, n_tb),
            in_specs=[
                pl.BlockSpec((t_blk, b_blk, L, 4 * Co), lambda bi, ti: (ti, bi, 0, 0)),
                pl.BlockSpec((K, Co, 4 * Co), lambda bi, ti: (0, 0, 0)),
                pl.BlockSpec((3, b_blk * L, Co), lambda bi, ti: (0, 0, 0)),
            ],
            out_specs=pl.BlockSpec((t_blk, b_blk, L, Co),
                                   lambda bi, ti: (ti, bi, 0, 0)),
            scratch_shapes=[
                pltpu.VMEM((b_blk, L + K - 1, Co), jnp.float32),  # haloed H state
                pltpu.VMEM((b_blk * L, Co), jnp.float32),         # C state
            ],
        ),
        compiler_params=pltpu.CompilerParams(
            dimension_semantics=("parallel", "arbitrary")),
    )(conv_x, wh, peep)

    # back to PyTorch layout (B, Co, T, L, 1)
    return jnp.transpose(out[:T], (1, 3, 0, 2))[..., None]


# ----------------------------------------------------------------------------------
# Pure-JAX reference with identical semantics (validation only).
# ----------------------------------------------------------------------------------
def conv_lstm_1d_reference(x, params, *, activation="tanh"):
    B, Cin, T, L, _ = x.shape
    w, b = params["conv_w"], params["conv_b"]
    wci, wcf, wco = params["w_ci"], params["w_cf"], params["w_co"]
    Co = wci.shape[0]
    K = w.shape[-1]
    pad = (K - 1) // 2
    act = jnp.tanh if activation == "tanh" else (lambda v: jnp.maximum(v, 0.0))

    H = jnp.zeros((B, Co, L), jnp.float32)
    C = jnp.zeros((B, Co, L), jnp.float32)
    outs = []
    for t in range(T):
        xt = x[:, :, t, :, 0]                               # (B, Cin, L)
        z = jnp.concatenate([xt, H], axis=1)                # (B, Cin+Co, L)
        conv = jax.lax.conv_general_dilated(
            z, w, window_strides=(1,), padding=[(pad, pad)],
            dimension_numbers=("NCH", "OIH", "NCH"),
            precision=jax.lax.Precision.HIGHEST) + b[None, :, None]
        ic, fc, gc, oc = jnp.split(conv, 4, axis=1)
        ig = jax.nn.sigmoid(ic + wci[None] * C)
        fg = jax.nn.sigmoid(fc + wcf[None] * C)
        C = fg * C + ig * act(gc)
        og = jax.nn.sigmoid(oc + wco[None] * C)
        H = og * act(C)
        outs.append(H)
    return jnp.stack(outs, axis=2)[..., None]               # (B, Co, T, L, 1)


if __name__ == "__main__":
    key = jax.random.PRNGKey(0)
    B, Cin, Co, T, L, K = 2, 4, 32, 8, 16, 3    # 'same' padding, odd K

    k1, k2, k3, k4, k5, k6 = jax.random.split(key, 6)
    params = {
        "conv_w": 0.1 * jax.random.normal(k1, (4 * Co, Cin + Co, K), jnp.float32),
        "conv_b": 0.1 * jax.random.normal(k2, (4 * Co,), jnp.float32),
        "w_ci": 0.1 * jax.random.normal(k3, (Co, L), jnp.float32),
        "w_cf": 0.1 * jax.random.normal(k4, (Co, L), jnp.float32),
        "w_co": 0.1 * jax.random.normal(k5, (Co, L), jnp.float32),
    }
    x = jax.random.normal(k6, (B, Cin, T, L, 1), jnp.float32)

    ref = jax.block_until_ready(conv_lstm_1d_reference(x, params, activation="tanh"))

    # Tight check with f32 matmul operands.
    out_f32 = jax.block_until_ready(
        conv_lstm_1d_pallas(x, params, activation="tanh",
                            compute_dtype=jnp.float32))
    assert out_f32.shape == (B, Co, T, L, 1), out_f32.shape
    err_f32 = float(jnp.max(jnp.abs(out_f32 - ref)))
    assert err_f32 < 5e-3, f"f32 path: max abs error too large: {err_f32}"

    # Default performance path: bf16 matmul operands, f32 accumulation / gate math.
    out_bf16 = jax.block_until_ready(
        conv_lstm_1d_pallas(x, params, activation="tanh"))
    assert out_bf16.shape == (B, Co, T, L, 1), out_bf16.shape
    err_bf16 = float(jnp.max(jnp.abs(out_bf16 - ref)))
    assert err_bf16 < 2e-2, f"bf16 path: max abs error too large: {err_bf16}"

    print("KERNEL_OK")
</pallas_src>

<mosaic_0001>
module attributes {stable_mosaic.version = 11 : i64} {
  func.func @_xconv_kernel(%arg0: i32, %arg1: i32, %arg2: memref<8x1x18x4xf32, #tpu.memory_space<vmem>>, %arg3: memref<3x4x128xf32, #tpu.memory_space<vmem>>, %arg4: memref<1x128xf32, #tpu.memory_space<vmem>>, %arg5: memref<8x1x16x128xf32, #tpu.memory_space<vmem>>) attributes {dimension_semantics = [#tpu.dimension_semantics<parallel>, #tpu.dimension_semantics<parallel>], iteration_bounds = array<i64: 1, 2>, scalar_prefetch = 0 : i64, scratch_operands = 0 : i64, tpu.core_type = #tpu.core_type<tc>, window_params = [{transform_indices = @transform_0, window_bounds = array<i64: 8, 1, 18, 4>}, {pipeline_mode = #tpu.pipeline_mode<synchronous>, transform_indices = @transform_1, window_bounds = array<i64: 3, 4, 128>}, {pipeline_mode = #tpu.pipeline_mode<synchronous>, transform_indices = @transform_2, window_bounds = array<i64: 1, 128>}, {transform_indices = @transform_3, window_bounds = array<i64: 8, 1, 16, 128>}]} {
    %c0 = arith.constant 0 : index
    %c0_0 = arith.constant 0 : index
    %c0_1 = arith.constant 0 : index
    %c0_2 = arith.constant 0 : index
    %0 = vector.load %arg2[%c0, %c0_0, %c0_1, %c0_2] : memref<8x1x18x4xf32, #tpu.memory_space<vmem>>, vector<8x1x18x4xf32>
    %c0_3 = arith.constant 0 : index
    %c0_4 = arith.constant 0 : index
    %c0_5 = arith.constant 0 : index
    %1 = vector.load %arg3[%c0_3, %c0_4, %c0_5] : memref<3x4x128xf32, #tpu.memory_space<vmem>>, vector<3x4x128xf32>
    %2 = vector.extract_strided_slice %0 {offsets = [0, 0, 0, 0], sizes = [8, 1, 16, 4], strides = [1, 1, 1, 1]} : vector<8x1x18x4xf32> to vector<8x1x16x4xf32>
    %3 = vector.shape_cast %2 : vector<8x1x16x4xf32> to vector<128x4xf32>
    %4 = vector.extract_strided_slice %1 {offsets = [0, 0, 0], sizes = [1, 4, 128], strides = [1, 1, 1]} : vector<3x4x128xf32> to vector<1x4x128xf32>
    %5 = vector.shape_cast %4 : vector<1x4x128xf32> to vector<4x128xf32>
    %cst = arith.constant dense<0.000000e+00> : vector<128x128xf32>
    %6 = tpu.matmul %3, %5, %cst {dimension_numbers = #tpu.dot_dimension_numbers<[1], [0], [0], [1], [0, 0, 1, 1], [], []>} : vector<128x4xf32>, vector<4x128xf32>, vector<128x128xf32> -> vector<128x128xf32>
    %7 = vector.extract_strided_slice %0 {offsets = [0, 0, 1, 0], sizes = [8, 1, 16, 4], strides = [1, 1, 1, 1]} : vector<8x1x18x4xf32> to vector<8x1x16x4xf32>
    %8 = vector.shape_cast %7 : vector<8x1x16x4xf32> to vector<128x4xf32>
    %9 = vector.extract_strided_slice %1 {offsets = [1, 0, 0], sizes = [1, 4, 128], strides = [1, 1, 1]} : vector<3x4x128xf32> to vector<1x4x128xf32>
    %10 = vector.shape_cast %9 : vector<1x4x128xf32> to vector<4x128xf32>
    %cst_6 = arith.constant dense<0.000000e+00> : vector<128x128xf32>
    %11 = tpu.matmul %8, %10, %cst_6 {dimension_numbers = #tpu.dot_dimension_numbers<[1], [0], [0], [1], [0, 0, 1, 1], [], []>} : vector<128x4xf32>, vector<4x128xf32>, vector<128x128xf32> -> vector<128x128xf32>
    %12 = arith.addf %6, %11 : vector<128x128xf32>
    %13 = vector.extract_strided_slice %0 {offsets = [0, 0, 2, 0], sizes = [8, 1, 16, 4], strides = [1, 1, 1, 1]} : vector<8x1x18x4xf32> to vector<8x1x16x4xf32>
    %14 = vector.shape_cast %13 : vector<8x1x16x4xf32> to vector<128x4xf32>
    %15 = vector.extract_strided_slice %1 {offsets = [2, 0, 0], sizes = [1, 4, 128], strides = [1, 1, 1]} : vector<3x4x128xf32> to vector<1x4x128xf32>
    %16 = vector.shape_cast %15 : vector<1x4x128xf32> to vector<4x128xf32>
    %cst_7 = arith.constant dense<0.000000e+00> : vector<128x128xf32>
    %17 = tpu.matmul %14, %16, %cst_7 {dimension_numbers = #tpu.dot_dimension_numbers<[1], [0], [0], [1], [0, 0, 1, 1], [], []>} : vector<128x4xf32>, vector<4x128xf32>, vector<128x128xf32> -> vector<128x128xf32>
    %18 = arith.addf %12, %17 : vector<128x128xf32>
    %c0_8 = arith.constant 0 : index
    %c0_9 = arith.constant 0 : index
    %19 = vector.load %arg4[%c0_8, %c0_9] : memref<1x128xf32, #tpu.memory_space<vmem>>, vector<1x128xf32>
    %20 = vector.broadcast %19 : vector<1x128xf32> to vector<128x128xf32>
    %21 = arith.addf %18, %20 : vector<128x128xf32>
    %22 = vector.shape_cast %21 : vector<128x128xf32> to vector<8x1x16x128xf32>
    %c0_10 = arith.constant 0 : index
    %c0_11 = arith.constant 0 : index
    %c0_12 = arith.constant 0 : index
    %c0_13 = arith.constant 0 : index
    %23 = vector.load %arg5[%c0_10, %c0_11, %c0_12, %c0_13] : memref<8x1x16x128xf32, #tpu.memory_space<vmem>>, vector<8x1x16x128xf32>
    tpu.vector_store %arg5[%c0_10, %c0_11, %c0_12, %c0_13], %22 {strides = array<i32>} : memref<8x1x16x128xf32, #tpu.memory_space<vmem>>, vector<8x1x16x128xf32>,
    return
  }
  func.func @transform_0(%arg0: i32, %arg1: i32) -> (i32, i32, i32, i32) {
    %c0_i32 = arith.constant 0 : i32
    %c0_i32_0 = arith.constant 0 : i32
    %c0_i32_1 = arith.constant 0 : i32
    return %arg0, %arg1, %c0_i32, %c0_i32_0 : i32, i32, i32, i32
  }
  func.func @transform_1(%arg0: i32, %arg1: i32) -> (i32, i32, i32) {
    %c0_i32 = arith.constant 0 : i32
    %c0_i32_0 = arith.constant 0 : i32
    %c0_i32_1 = arith.constant 0 : i32
    %c0_i32_2 = arith.constant 0 : i32
    return %c0_i32, %c0_i32_0, %c0_i32_1 : i32, i32, i32
  }
  func.func @transform_2(%arg0: i32, %arg1: i32) -> (i32, i32) {
    %c0_i32 = arith.constant 0 : i32
    %c0_i32_0 = arith.constant 0 : i32
    %c0_i32_1 = arith.constant 0 : i32
    return %c0_i32, %c0_i32_0 : i32, i32
  }
  func.func @transform_3(%arg0: i32, %arg1: i32) -> (i32, i32, i32, i32) {
    %c0_i32 = arith.constant 0 : i32
    %c0_i32_0 = arith.constant 0 : i32
    %c0_i32_1 = arith.constant 0 : i32
    return %arg0, %arg1, %c0_i32, %c0_i32_0 : i32, i32, i32, i32
  }
}

</mosaic_0001>

<bundles_post_ra>
// kernel: tpu_custom_call.1
= control target key start
LH: loop header
LB: loop body
LE: loop exit
PB: predicated region body
PF: predicated region fallthrough
CT: control target
= control target key end

     0   :  { %8 = vsyncpa [#allocation4], 0  ;;  %s1974_s0 = inlined_call_operand.vmem [shape: f32[8,2,18,4], index: 0, kind: input, shape index: {}]   ;;  %s1975_s1 = inlined_call_operand.vmem [shape: f32[3,4,128], index: 1, kind: input, shape index: {}]   ;;  %s1976_s2 = inlined_call_operand.vmem [shape: f32[1,128], index: 2, kind: input, shape index: {}]   ;;  %s1977_s3 = inlined_call_operand.hbm [shape: f32[8,2,16,128], index: 3, kind: output, shape index: {}]  }
   0x1   :  { %10 = vsyncpa [#allocation4 + $0x1], 0  ;;  %s1516_s12 = smov 0   ;;  %s1518_s13 = smov 0  }
   0x2   :  { %s1520_s14 = smov 0   ;;  %s1522_s15 = smov 0  }
   0x3   :  { %s1524_s16 = smov 0   ;;  %s1526_s17 = smov 0  }
   0x4 LB: > { %s1170_s18 = sadd.s32 4294967295, %s1487_s17   ;;  %s1171_s19 = sadd.s32 4294967294, %s1487_s17   ;;  %s1487_s17 = sphi %s1526_s17, %s16_s17   ;;  %s1483_s16 = sphi %s1524_s16, %s1984_s16   ;;  %s1479_s15 = sphi %s1522_s15, %s1983_s15   ;;  %s1475_s14 = sphi %s1520_s14, %s1982_s14   ;;  %s1471_s13 = sphi %s1518_s13, %s1981_s13   ;;  %s1467_s12 = sphi %s1516_s12, %s1980_s12  }
   0x5   : > { %s25_s20 = sadd.s32 1, %s1483_s16  ;;  %s37_s21 = sadd.s32 1, %s1475_s14 }
   0x6   : > { %p26_p0 = scmp.ge.s32.totalorder %s25_s20, 2  ;;  %p44_p1 = scmp.ne.s32.totalorder %s1475_s14, %s1471_s13 }
   0x7   : > { %p45_p2 = scmp.eq.s32.totalorder %s1487_s17, 0  ;;  %p118_p3 = scmp.eq.s32.totalorder %s1170_s18, 1 }
   0x8   : > { %s1986_s20 = smov (%p26_p0, %s25_s20), 0  ;;  %p123_p6 = scmp.ne.s32.totalorder %s1471_s13, %s1467_s12 }
   0x9   : > { %p46_p4 = por %p45_p2, %p44_p1  ;;  %p1555_p5 = por %p118_p3, %p44_p1 }
   0xa   : > { %s33_s23 = ssub.s32 %s1483_s16, %s1986_s20  ;;  %p124_p8 = scmp.eq.s32.totalorder %s1171_s19, 1 }
   0xb   : > { %p35_p7 = scmp.eq.s32.totalorder %s33_s23, 0  ;;  %p1173_p10 = scmp.ge.s32.totalorder %s1487_s17, 2 }
   0xc   : > { %p1566_p9 = por %p124_p8, %p123_p6 }
   0xd   : > { %s1564_s24 = scalar_select %p35_p7, %s1475_s14, %s37_s21  }
   0xe   : > { %146 = sbr.rel (%p1173_p10) target bundleno = 36 (0x24), region = 24 }
  0x13   : > { %149 = sbr.rel (!%p46_p4) target bundleno = 36 (0x24), region = 28  ;;  %s151_s26 = sand.u32 (%p46_p4), 1, %s1475_s14  }
  0x14   : > { %s1367_s27 = smul.u32 (%p46_p4), 24, %s1483_s16 }
  0x15   : > { %s1366_s28 = smul.u32 (%p46_p4), 192, %s151_s26 }
  0x16   : > { %s1578_s4 = scalar_lea.vmem (%p46_p4), %s1974_s0, %s1367_s27 }
  0x17   : > { %v234_v0 = vld [vmem:[%s1578_s4] sm:$0xff] (%p46_p4)  ;;  %v236_v1 = vld [vmem:[%s1578_s4 + $0x8] sm:$0xff] (%p46_p4)  ;;  %v238_v2 = vld [vmem:[%s1578_s4 + $0x10] sm:$0xff] (%p46_p4)  ;;  %s1583_s5 = scalar_lea.vmem (%p46_p4), [#allocation2], %s1366_s28 }
  0x18   : > { %235 = vst [vmem:[%s1583_s5] sm:$0xff] %v234_v0  ;;  %237 = vst [vmem:[%s1583_s5 + $0x8] sm:$0xff] %v236_v1  ;;  %v240_v3 = vld [vmem:[%s1578_s4 + $0x30] sm:$0xff]  ;;  %v242_v4 = vld [vmem:[%s1578_s4 + $0x38] sm:$0xff] }
  0x19   : > { %239 = vst [vmem:[%s1583_s5 + $0x10] sm:$0xff] %v238_v2  ;;  %v244_v5 = vld [vmem:[%s1578_s4 + $0x40] sm:$0xff]  ;;  %241 = vst [vmem:[%s1583_s5 + $0x18] sm:$0xff] %v240_v3  ;;  %v248_v7 = vld [vmem:[%s1578_s4 + $0x68] sm:$0xff] }
  0x1a   : > { %243 = vst [vmem:[%s1583_s5 + $0x20] sm:$0xff] %v242_v4  ;;  %245 = vst [vmem:[%s1583_s5 + $0x28] sm:$0xff] %v244_v5  ;;  %v246_v6 = vld [vmem:[%s1578_s4 + $0x60] sm:$0xff]  ;;  %v250_v8 = vld [vmem:[%s1578_s4 + $0x70] sm:$0xff] }
  0x1b   : > { %247 = vst [vmem:[%s1583_s5 + $0x30] sm:$0xff] %v246_v6  ;;  %249 = vst [vmem:[%s1583_s5 + $0x38] sm:$0xff] %v248_v7  ;;  %v252_v9 = vld [vmem:[%s1578_s4 + $0x90] sm:$0xff]  ;;  %v254_v10 = vld [vmem:[%s1578_s4 + $0x98] sm:$0xff] }
  0x1c   : > { %251 = vst [vmem:[%s1583_s5 + $0x40] sm:$0xff] %v250_v8  ;;  %v256_v11 = vld [vmem:[%s1578_s4 + $0xa0] sm:$0xff]  ;;  %253 = vst [vmem:[%s1583_s5 + $0x48] sm:$0xff] %v252_v9  ;;  %v260_v13 = vld [vmem:[%s1578_s4 + $0xc8] sm:$0xff] }
  0x1d   : > { %255 = vst [vmem:[%s1583_s5 + $0x50] sm:$0xff] %v254_v10  ;;  %257 = vst [vmem:[%s1583_s5 + $0x58] sm:$0xff] %v256_v11  ;;  %v258_v12 = vld [vmem:[%s1578_s4 + $0xc0] sm:$0xff]  ;;  %v262_v14 = vld [vmem:[%s1578_s4 + $0xd0] sm:$0xff] }
  0x1e   : > { %259 = vst [vmem:[%s1583_s5 + $0x60] sm:$0xff] %v258_v12  ;;  %261 = vst [vmem:[%s1583_s5 + $0x68] sm:$0xff] %v260_v13  ;;  %v264_v15 = vld [vmem:[%s1578_s4 + $0xf0] sm:$0xff]  ;;  %v266_v16 = vld [vmem:[%s1578_s4 + $0xf8] sm:$0xff] }
  0x1f   : > { %263 = vst [vmem:[%s1583_s5 + $0x70] sm:$0xff] %v262_v14  ;;  %v268_v17 = vld [vmem:[%s1578_s4 + $0x100] sm:$0xff]  ;;  %265 = vst [vmem:[%s1583_s5 + $0x78] sm:$0xff] %v264_v15  ;;  %v272_v19 = vld [vmem:[%s1578_s4 + $0x128] sm:$0xff] }
  0x20   : > { %267 = vst [vmem:[%s1583_s5 + $0x80] sm:$0xff] %v266_v16  ;;  %269 = vst [vmem:[%s1583_s5 + $0x88] sm:$0xff] %v268_v17  ;;  %v270_v18 = vld [vmem:[%s1578_s4 + $0x120] sm:$0xff]  ;;  %v274_v20 = vld [vmem:[%s1578_s4 + $0x130] sm:$0xff] }
  0x21   : > { %271 = vst [vmem:[%s1583_s5 + $0x90] sm:$0xff] %v270_v18  ;;  %273 = vst [vmem:[%s1583_s5 + $0x98] sm:$0xff] %v272_v19  ;;  %v276_v21 = vld [vmem:[%s1578_s4 + $0x150] sm:$0xff]  ;;  %v278_v22 = vld [vmem:[%s1578_s4 + $0x158] sm:$0xff] }
  0x22   : > { %275 = vst [vmem:[%s1583_s5 + $0xa0] sm:$0xff] %v274_v20  ;;  %v280_v23 = vld [vmem:[%s1578_s4 + $0x160] sm:$0xff]  ;;  %277 = vst [vmem:[%s1583_s5 + $0xa8] sm:$0xff] %v276_v21 }
  0x23   : > { %279 = vst [vmem:[%s1583_s5 + $0xb0] sm:$0xff] %v278_v22  ;;  %281 = vst [vmem:[%s1583_s5 + $0xb8] sm:$0xff] %v280_v23 }
  0x24 PF: > { %p1175_p11 = scmp.ge.s32.totalorder %s1487_s17, 1  ;;  %p286_p12 = scmp.lt.s32.totalorder %s1487_s17, 3 }
  0x26   : > { %p287_p13 = pnand %p1175_p11, %p286_p12 }
  0x27   : > { %s1636_s8 = sand.u32 (!%p287_p13), 1, %s1471_s13  }
  0x28   : > { %290 = sbr.rel (%p287_p13) target bundleno = 307 (0x133), region = 66  ;;  %s1176_s23 = sshll.u32 (!%p287_p13), %s1636_s8, 7 }
  0x29   : > { %s1368_s9 = smul.u32 (!%p287_p13), 192, %s1636_s8  ;;  %s1890_s28 = scalar_lea.vmem (!%p287_p13), [#allocation3], %s1176_s23 }
  0x2a   : > { %s1049_s29 = scalar_lea.sflag (!%p287_p13), [#allocation4], %s1636_s8 }
  0x2b   : > { %s1651_s21 = scalar_lea.vmem (!%p287_p13), [#allocation2], %s1368_s9 }
  0x2d   : > { %v343_v24 = vld [vmem:[%s1975_s1 + $0x4] sm:$0xf]  ;;  %vm443_vm0 = vcmask 1043456   ;;  %v342_v25 = vld [vmem:[%s1975_s1] sm:$0xf]  ;;  %v1657_v28 = vld [vmem:[%s1651_s21 + $0x8] sm:$0xff] }
  0x2e   : > { %1364 = vmatprep.subr.msk.mxu1 %vm443_vm0, %v343_v24  ;;  %1286 = vmatprep.subr.msk.mxu0 %vm443_vm0, %v343_v24  ;;  %v344_v26 = vld [vmem:[%s1975_s1 + $0x8] sm:$0xf]  ;;  %v1654_v27 = vld [vmem:[%s1651_s21] sm:$0xff]  ;;  %vm369_vm1 = vcmask 1046528   ;;  %vm410_vm2 = vcmask 31744   ;;  %v371_v31 = vrot.slane %v1657_v28, 1 }
  0x2f   : > { %1365 = vmatpush3.msk.msra.mxu1 %vm443_vm0, %v343_v24  ;;  %1287 = vmatpush3.msk.msra.mxu0 %vm443_vm0, %v343_v24  ;;  %v1660_v29 = vld [vmem:[%s1651_s21 + $0x60] sm:$0xff]  ;;  %v370_v30 = vrot.slane %v1654_v27, 1  ;;  %v1665_v32 = vld [vmem:[%s1651_s21 + $0x68] sm:$0xff]  ;;  %v1669_v34 = vld [vmem:[%s1651_s21 + $0x10] sm:$0x3]  ;;  %v773_v21 = vrot.slane %v1654_v27, 2 }
  0x30   : > { %1312 = vmatprep.subr.msk.mxu1 %vm443_vm0, %v342_v25  ;;  %1338 = vmatprep.subr.msk.mxu0 %vm443_vm0, %v344_v26  ;;  %v390_v33 = vrot.slane %v1660_v29, 1  ;;  %v391_v35 = vrot.slane %v1665_v32, 1  ;;  %v373_v36 = vrot.slane %v1669_v34, 1  ;;  %v1674_v37 = vld [vmem:[%s1651_s21 + $0x70] sm:$0x3]  ;;  %v1677_v38 = vld [vmem:[%s1651_s21 + $0x18] sm:$0xff] }
  0x31   : > { %v372_v39 = vsel %vm369_vm1, %v370_v30, %v371_v31  ;;  %v393_v40 = vrot.slane %v1674_v37, 1  ;;  %v1682_v41 = vld [vmem:[%s1651_s21 + $0x20] sm:$0xff]  ;;  %v375_v42 = vrot.slane %v1677_v38, 1  ;;  %v1686_v43 = vld [vmem:[%s1651_s21 + $0x78] sm:$0xff]  ;;  %v1697_v49 = vld [vmem:[%s1651_s21 + $0x28] sm:$0x3] }
  0x32   : > { %v1689_v44 = vld [vmem:[%s1651_s21 + $0x80] sm:$0xff]  ;;  %1288 = vmatprep.mubr.msk.f32.mxu0 %vm410_vm2, %v372_v39  ;;  %v392_v45 = vsel %vm369_vm1, %v390_v33, %v391_v35  ;;  %v374_v46 = vsel %vm369_vm1, %v371_v31, %v373_v36  ;;  %v376_v47 = vrot.slane %v1682_v41, 1  ;;  %v395_v48 = vrot.slane %v1686_v43, 1  ;;  %v1700_v50 = vld [vmem:[%s1651_s21 + $0x88] sm:$0x3]  ;;  %v1709_v55 = vld [vmem:[%s1651_s21 + $0x30] sm:$0xff] }
  0x33   : > { %1300 = vmatprep.mubr.msk.f32.mxu1 %vm410_vm2, %v392_v45  ;;  %1289 = vmatmul.mubr.msk.f32.vlgmr.msra.gmra.mxu0 %vm410_vm2, %v374_v46  ;;  %v394_v51 = vsel %vm369_vm1, %v391_v35, %v393_v40  ;;  %v396_v52 = vrot.slane %v1689_v44, 1  ;;  %v378_v53 = vrot.slane %v1697_v49, 1  ;;  %v398_v54 = vrot.slane %v1700_v50, 1  ;;  %v1712_v56 = vld [vmem:[%s1651_s21 + $0x38] sm:$0xff]  ;;  %v1715_v57 = vld [vmem:[%s1651_s21 + $0x90] sm:$0xff]  ;;  %v1739_v5 = vld [vmem:[%s1651_s21 + $0x48] sm:$0xff] }
  0x34   : > { %1301 = vmatmul.mubr.msk.f32.vlgmr.msra.gmra.mxu1 %vm410_vm2, %v394_v51  ;;  %1339 = vmatpush3.msk.msra.mxu0 %vm443_vm0, %v344_v26  ;;  %v377_v58 = vsel %vm369_vm1, %v375_v42, %v376_v47  ;;  %v380_v59 = vrot.slane %v1709_v55, 1  ;;  %v381_v60 = vrot.slane %v1712_v56, 1  ;;  %v1723_v61 = vld [vmem:[%s1651_s21 + $0x98] sm:$0xff]  ;;  %v400_v62 = vrot.slane %v1715_v57, 1  ;;  %v1727_v63 = vld [vmem:[%s1651_s21 + $0x40] sm:$0x3] }
  0x35   : > { %1313 = vmatpush3.msk.msra.mxu1 %vm443_vm0, %v342_v25  ;;  %1291 = vmatprep.mubr.msk.f32.mxu0 %vm410_vm2, %v377_v58  ;;  %v397_v0 = vsel %vm369_vm1, %v395_v48, %v396_v52  ;;  %v379_v1 = vsel %vm369_vm1, %v376_v47, %v378_v53  ;;  %v399_v2 = vsel %vm369_vm1, %v396_v52, %v398_v54  ;;  %v401_v3 = vrot.slane %v1723_v61, 1  ;;  %v1736_v4 = vld [vmem:[%s1651_s21 + $0xa0] sm:$0x3]  ;;  %v1742_v6 = vld [vmem:[%s1651_s21 + $0x50] sm:$0xff]  ;;  %v1750_v11 = vld [vmem:[%s1651_s21 + $0xa8] sm:$0xff] }
  0x36   : > { %1303 = vmatprep.mubr.msk.f32.mxu1 %vm410_vm2, %v397_v0  ;;  %v382_v7 = vsel %vm369_vm1, %v380_v59, %v381_v60  ;;  %v383_v8 = vrot.slane %v1727_v63, 1  ;;  %v403_v9 = vrot.slane %v1736_v4, 1  ;;  %v385_v10 = vrot.slane %v1739_v5, 1  ;;  %v1753_v12 = vld [vmem:[%s1651_s21 + $0xb0] sm:$0xff]  ;;  %v329_v17 = vld [vmem:[%s1651_s21 + $0x58] sm:$0x3] }
  0x37   : > { %1292 = vmatmul.mubr.msk.f32.gmra.mxu0 %vm410_vm2, %v379_v1  ;;  %v402_v13 = vsel %vm369_vm1, %v400_v62, %v401_v3  ;;  %v386_v14 = vrot.slane %v1742_v6, 1  ;;  %v405_v15 = vrot.slane %v1750_v11, 1  ;;  %v406_v16 = vrot.slane %v1753_v12, 1  ;;  %v1765_v20 = vld [vmem:[%s1651_s21 + $0xb8] sm:$0x3] }
  0x38   : > { %1304 = vmatmul.mubr.msk.f32.gmra.mxu1 %vm410_vm2, %v399_v2  ;;  %1294 = vmatprep.mubr.msk.f32.mxu0 %vm410_vm2, %v382_v7  ;;  %v384_v18 = vsel %vm369_vm1, %v381_v60, %v383_v8  ;;  %v388_v19 = vrot.slane %v329_v17, 1  ;;  %v404_v22 = vsel %vm369_vm1, %v401_v3, %v403_v9  ;;  %v408_v24 = vrot.slane %v1765_v20, 1 }
  0x39   : > { %1306 = vmatprep.mubr.msk.f32.mxu1 %vm410_vm2, %v402_v13  ;;  %v387_v23 = vsel %vm369_vm1, %v385_v10, %v386_v14  ;;  %v774_v25 = vrot.slane %v1657_v28, 2  ;;  %v407_v26 = vsel %vm369_vm1, %v405_v15, %v406_v16  ;;  %vm772_vm3 = vcmask 1045504  }
  0x3a   : > { %v776_v30 = vrot.slane %v1669_v34, 2  ;;  %v389_v31 = vsel %vm369_vm1, %v386_v14, %v388_v19  ;;  %v409_v33 = vsel %vm369_vm1, %v406_v16, %v408_v24  ;;  %v778_v36 = vrot.slane %v1677_v38, 2 }
  0x3b   : > { %1295 = vmatmul.mubr.msk.f32.gmra.mxu0 %vm410_vm2, %v384_v18  ;;  %v775_v35 = vsel %vm772_vm3, %v773_v21, %v774_v25  ;;  %v779_v39 = vrot.slane %v1682_v41, 2  ;;  %v781_v40 = vrot.slane %v1697_v49, 2  ;;  %v783_v45 = vrot.slane %v1709_v55, 2 }
  0x3c   : > { %1307 = vmatmul.mubr.msk.f32.gmra.mxu1 %vm410_vm2, %v404_v22  ;;  %1297 = vmatprep.mubr.msk.f32.mxu0 %vm410_vm2, %v387_v23  ;;  %v777_v34 = vsel %vm772_vm3, %v774_v25, %v776_v30  ;;  %v784_v46 = vrot.slane %v1712_v56, 2  ;;  %v786_v48 = vrot.slane %v1727_v63, 2  ;;  %v788_v49 = vrot.slane %v1739_v5, 2  ;;  %v1887_v23 = vld [vmem:[%s1976_s2] ss:$0 sm:$0xff] }
  0x3d   : > { %1309 = vmatprep.mubr.msk.f32.mxu1 %vm410_vm2, %v407_v26  ;;  %v780_v42 = vsel %vm772_vm3, %v778_v36, %v779_v39  ;;  %v782_v47 = vsel %vm772_vm3, %v779_v39, %v781_v40  ;;  %v789_v51 = vrot.slane %v1742_v6, 2  ;;  %v791_v52 = vrot.slane %v329_v17, 2 }
  0x3e   : > { %v793_v53 = vrot.slane %v1660_v29, 2  ;;  %v794_v54 = vrot.slane %v1665_v32, 2  ;;  %v796_v58 = vrot.slane %v1674_v37, 2  ;;  %v798_v59 = vrot.slane %v1686_v43, 2 }
  0x3f   : > { %1298 = vmatmul.mubr.msk.f32.gmra.mxu0 %vm410_vm2, %v389_v31  ;;  %v799_v60 = vrot.slane %v1689_v44, 2  ;;  %v801_v37 = vrot.slane %v1700_v50, 2  ;;  %v803_v63 = vrot.slane %v1715_v57, 2  ;;  %v804_v0 = vrot.slane %v1723_v61, 2 }
  0x40   : > { %1310 = vmatmul.mubr.msk.f32.gmra.mxu1 %vm410_vm2, %v409_v33  ;;  %1340 = vmatprep.mubr.msk.f32.mxu0 %vm410_vm2, %v775_v35  ;;  %v806_v50 = vrot.slane %v1736_v4, 2  ;;  %v808_v2 = vrot.slane %v1750_v11, 2  ;;  %v809_v3 = vrot.slane %v1753_v12, 2  ;;  %v811_v4 = vrot.slane %v1765_v20, 2 }
  0x41   : > { %1314 = vmatprep.mubr.msk.f32.mxu1 %vm410_vm2, %v1654_v27  ;;  %v785_v27 = vsel %vm772_vm3, %v783_v45, %v784_v46  ;;  %v800_v62 = vsel %vm772_vm3, %v798_v59, %v799_v60  ;;  %v802_v1 = vsel %vm772_vm3, %v799_v60, %v801_v37 }
  0x43   : > { %1341 = vmatmul.mubr.msk.f32.vlgmr.msra.gmra.mxu0 %vm410_vm2, %v777_v34 }
  0x44   : > { %1315 = vmatmul.mubr.msk.f32.vlgmr.msra.gmra.mxu1 %vm410_vm2, %v1657_v28  ;;  %1343 = vmatprep.mubr.msk.f32.mxu0 %vm410_vm2, %v780_v42  ;;  %v787_v28 = vsel %vm772_vm3, %v784_v46, %v786_v48 }
  0x45   : > { %1317 = vmatprep.mubr.msk.f32.mxu1 %vm410_vm2, %v1677_v38  ;;  %v790_v38 = vsel %vm772_vm3, %v788_v49, %v789_v51 }
  0x47   : > { %1344 = vmatmul.mubr.msk.f32.gmra.mxu0 %vm410_vm2, %v782_v47 }
  0x48   : > { %1318 = vmatmul.mubr.msk.f32.gmra.mxu1 %vm410_vm2, %v1682_v41  ;;  %1346 = vmatprep.mubr.msk.f32.mxu0 %vm410_vm2, %v785_v27  ;;  %v792_v41 = vsel %vm772_vm3, %v789_v51, %v791_v52 }
  0x49   : > { %1320 = vmatprep.mubr.msk.f32.mxu1 %vm410_vm2, %v1709_v55  ;;  %v795_v55 = vsel %vm772_vm3, %v793_v53, %v794_v54 }
  0x4b   : > { %1347 = vmatmul.mubr.msk.f32.gmra.mxu0 %vm410_vm2, %v787_v28 }
  0x4c   : > { %1321 = vmatmul.mubr.msk.f32.gmra.mxu1 %vm410_vm2, %v1712_v56  ;;  %1349 = vmatprep.mubr.msk.f32.mxu0 %vm410_vm2, %v790_v38  ;;  %v797_v56 = vsel %vm772_vm3, %v794_v54, %v796_v58 }
  0x4d   : > { %1323 = vmatprep.mubr.msk.f32.mxu1 %vm410_vm2, %v1739_v5 }
  0x4f   : > { %1350 = vmatmul.mubr.msk.f32.gmra.mxu0 %vm410_vm2, %v792_v41 }
  0x50   : > { %1324 = vmatmul.mubr.msk.f32.gmra.mxu1 %vm410_vm2, %v1742_v6  ;;  %1352 = vmatprep.mubr.msk.f32.mxu0 %vm410_vm2, %v795_v55 }
  0x51   : > { %1326 = vmatprep.mubr.msk.f32.mxu1 %vm410_vm2, %v1660_v29  ;;  %v805_v29 = vsel %vm772_vm3, %v803_v63, %v804_v0 }
  0x53   : > { %1353 = vmatmul.mubr.msk.f32.gmra.mxu0 %vm410_vm2, %v797_v56 }
  0x54   : > { %1327 = vmatmul.mubr.msk.f32.gmra.mxu1 %vm410_vm2, %v1665_v32  ;;  %1355 = vmatprep.mubr.msk.f32.mxu0 %vm410_vm2, %v800_v62  ;;  %v807_v32 = vsel %vm772_vm3, %v804_v0, %v806_v50 }
  0x55   : > { %1329 = vmatprep.mubr.msk.f32.mxu1 %vm410_vm2, %v1686_v43  ;;  %v810_v43 = vsel %vm772_vm3, %v808_v2, %v809_v3 }
  0x57   : > { %1356 = vmatmul.mubr.msk.f32.gmra.mxu0 %vm410_vm2, %v802_v1 }
  0x58   : > { %1330 = vmatmul.mubr.msk.f32.gmra.mxu1 %vm410_vm2, %v1689_v44  ;;  %1358 = vmatprep.mubr.msk.f32.mxu0 %vm410_vm2, %v805_v29  ;;  %v812_v44 = vsel %vm772_vm3, %v809_v3, %v811_v4 }
  0x59   : > { %1332 = vmatprep.mubr.msk.f32.mxu1 %vm410_vm2, %v1715_v57 }
  0x5b   : > { %1359 = vmatmul.mubr.msk.f32.gmra.mxu0 %vm410_vm2, %v807_v32 }
  0x5c   : > { %1333 = vmatmul.mubr.msk.f32.gmra.mxu1 %vm410_vm2, %v1723_v61  ;;  %1361 = vmatprep.mubr.msk.f32.mxu0 %vm410_vm2, %v810_v43 }
  0x5d   : > { %1335 = vmatprep.mubr.msk.f32.mxu1 %vm410_vm2, %v1750_v11 }
  0x5f   : > { %1362 = vmatmul.mubr.msk.f32.gmra.mxu0 %vm410_vm2, %v812_v44 }
  0x60   : > { %1336 = vmatmul.mubr.msk.f32.gmra.mxu1 %vm410_vm2, %v1753_v12 }
  0xf3   : > { %v1290_v57 = vpop.f32.mrf.mxu0 }
  0xf4   : > { %v1867_v5 = vpop.f32.mrf.mxu1 }
  0xf5   : > { %v513_v6 = vpop.f32.mrf.mxu0 }
  0xf6   : > { %v1869_v7 = vpop.f32.mrf.mxu1 }
  0xf7   : > { %v1293_v61 = vpop.f32.mrf.mxu0 }
  0xf8   : > { %v1871_v8 = vpop.f32.mrf.mxu1 }
  0xf9   : > { %v523_v9 = vpop.f32.mrf.mxu0 }
  0xfa   : > { %v1873_v10 = vpop.f32.mrf.mxu1 }
  0xfb   : > { %v1296_v13 = vpop.f32.mrf.mxu0 }
  0xfc   : > { %v1875_v11 = vpop.f32.mrf.mxu1 }
  0xfd   : > { %v533_v14 = vpop.f32.mrf.mxu0 }
  0xfe   : > { %v1877_v15 = vpop.f32.mrf.mxu1 }
  0xff   : > { %v1299_v12 = vpop.f32.mrf.mxu0 }
 0x100   : > { %v1879_v16 = vpop.f32.mrf.mxu1 }
 0x101   : > { %v543_v17 = vpop.f32.mrf.mxu0 }
 0x102   : > { %v1881_v18 = vpop.f32.mrf.mxu1 }
 0x103   : > { %v1342_v19 = vpop.f32.mrf.mxu0 }
 0x104   : > { %v1316_v20 = vpop.f32.mrf.mxu1 }
 0x105   : > { %v699_v21 = vadd.f32 %v1316_v20, %v1290_v57  ;;  %v914_v22 = vpop.f32.mrf.mxu0 }
 0x106   : > { %v693_v24 = vpop.f32.mrf.mxu1 }
 0x107   : > { %v994_v25 = vadd.f32 %v1342_v19, %v699_v21  ;;  %v694_v26 = vadd.f32 %v693_v24, %v513_v6  ;;  %v1345_v30 = vpop.f32.mrf.mxu0 }
 0x108   : > { %v1319_v31 = vpop.f32.mrf.mxu1 }
 0x109   : > { %v1017_v33 = vadd.f32 %v1887_v23, %v994_v25  ;;  %v993_v35 = vadd.f32 %v914_v22, %v694_v26  ;;  %v709_v36 = vadd.f32 %v1319_v31, %v1293_v61  ;;  %v924_v39 = vpop.f32.mrf.mxu0 }
 0x10a   : > { %v703_v34 = vpop.f32.mrf.mxu1 }
 0x10b   : > { %1033 = vst [vmem:[%s1890_s28 + $0x8] sm:$0xff] %v1017_v33  ;;  %v1016_v40 = vadd.f32 %v1887_v23, %v993_v35  ;;  %v996_v42 = vadd.f32 %v1345_v30, %v709_v36  ;;  %v704_v45 = vadd.f32 %v703_v34, %v523_v9  ;;  %v1348_v46 = vpop.f32.mrf.mxu0 }
 0x10c   : > { %v1322_v47 = vpop.f32.mrf.mxu1 }
 0x10d   : > { %1032 = vst [vmem:[%s1890_s28] sm:$0xff] %v1016_v40  ;;  %v1019_v48 = vadd.f32 %v1887_v23, %v996_v42  ;;  %v995_v27 = vadd.f32 %v924_v39, %v704_v45  ;;  %v719_v49 = vadd.f32 %v1322_v47, %v1296_v13  ;;  %v934_v51 = vpop.f32.mrf.mxu0 }
 0x10e   : > { %v713_v28 = vpop.f32.mrf.mxu1 }
 0x10f   : > { %1035 = vst [vmem:[%s1890_s28 + $0x18] sm:$0xff] %v1019_v48  ;;  %v1018_v52 = vadd.f32 %v1887_v23, %v995_v27  ;;  %v998_v38 = vadd.f32 %v1348_v46, %v719_v49  ;;  %v714_v53 = vadd.f32 %v713_v28, %v533_v14  ;;  %v1351_v54 = vpop.f32.mrf.mxu0 }
 0x110   : > { %v1325_v41 = vpop.f32.mrf.mxu1 }
 0x111   : > { %1034 = vst [vmem:[%s1890_s28 + $0x10] sm:$0xff] %v1018_v52  ;;  %v1021_v58 = vadd.f32 %v1887_v23, %v998_v38  ;;  %v997_v55 = vadd.f32 %v934_v51, %v714_v53  ;;  %v729_v59 = vadd.f32 %v1325_v41, %v1299_v12  ;;  %v944_v60 = vpop.f32.mrf.mxu0 }
 0x112   : > { %v723_v56 = vpop.f32.mrf.mxu1 }
 0x113   : > { %1037 = vst [vmem:[%s1890_s28 + $0x28] sm:$0xff] %v1021_v58  ;;  %v1020_v37 = vadd.f32 %v1887_v23, %v997_v55  ;;  %v1000_v62 = vadd.f32 %v1351_v54, %v729_v59  ;;  %v724_v63 = vadd.f32 %v723_v56, %v543_v17  ;;  %v1354_v0 = vpop.f32.mrf.mxu0 }
 0x114   : > { %v1328_v1 = vpop.f32.mrf.mxu1 }
 0x115   : > { %1036 = vst [vmem:[%s1890_s28 + $0x20] sm:$0xff] %v1020_v37  ;;  %v1023_v50 = vadd.f32 %v1887_v23, %v1000_v62  ;;  %v999_v29 = vadd.f32 %v944_v60, %v724_v63  ;;  %v739_v2 = vadd.f32 %v1328_v1, %v1867_v5  ;;  %v954_v3 = vpop.f32.mrf.mxu0 }
 0x116   : > { %v733_v32 = vpop.f32.mrf.mxu1 }
 0x117   : > { %1039 = vst [vmem:[%s1890_s28 + $0x38] sm:$0xff] %v1023_v50  ;;  %v1022_v4 = vadd.f32 %v1887_v23, %v999_v29  ;;  %v1002_v43 = vadd.f32 %v1354_v0, %v739_v2  ;;  %v734_v44 = vadd.f32 %v733_v32, %v1869_v7  ;;  %v1357_v57 = vpop.f32.mrf.mxu0 }
 0x118   : > { %v1331_v6 = vpop.f32.mrf.mxu1 }
 0x119   : > { %1038 = vst [vmem:[%s1890_s28 + $0x30] sm:$0xff] %v1022_v4  ;;  %v1025_v61 = vadd.f32 %v1887_v23, %v1002_v43  ;;  %v1001_v9 = vadd.f32 %v954_v3, %v734_v44  ;;  %v749_v13 = vadd.f32 %v1331_v6, %v1871_v8  ;;  %v964_v14 = vpop.f32.mrf.mxu0 }
 0x11a   : > { %v743_v5 = vpop.f32.mrf.mxu1 }
 0x11b   : > { %1041 = vst [vmem:[%s1890_s28 + $0x48] sm:$0xff] %v1025_v61  ;;  %v1024_v12 = vadd.f32 %v1887_v23, %v1001_v9  ;;  %v1004_v17 = vadd.f32 %v1357_v57, %v749_v13  ;;  %v744_v19 = vadd.f32 %v743_v5, %v1873_v10  ;;  %v1360_v20 = vpop.f32.mrf.mxu0 }
 0x11c   : > { %v1334_v7 = vpop.f32.mrf.mxu1 }
 0x11d   : > { %1040 = vst [vmem:[%s1890_s28 + $0x40] sm:$0xff] %v1024_v12  ;;  %v1027_v21 = vadd.f32 %v1887_v23, %v1004_v17  ;;  %v1003_v22 = vadd.f32 %v964_v14, %v744_v19  ;;  %v759_v24 = vadd.f32 %v1334_v7, %v1875_v11  ;;  %v974_v25 = vpop.f32.mrf.mxu0 }
 0x11e   : > { %v753_v8 = vpop.f32.mrf.mxu1 }
 0x11f   : > { %1043 = vst [vmem:[%s1890_s28 + $0x58] sm:$0xff] %v1027_v21  ;;  %v1026_v26 = vadd.f32 %v1887_v23, %v1003_v22  ;;  %v1006_v30 = vadd.f32 %v1360_v20, %v759_v24  ;;  %v754_v31 = vadd.f32 %v753_v8, %v1877_v15  ;;  %v1363_v33 = vpop.f32.mrf.mxu0 }
 0x120   : > { %v1337_v10 = vpop.f32.mrf.mxu1 }
 0x121   : > { %1042 = vst [vmem:[%s1890_s28 + $0x50] sm:$0xff] %v1026_v26  ;;  %v1029_v35 = vadd.f32 %v1887_v23, %v1006_v30  ;;  %v1005_v36 = vadd.f32 %v974_v25, %v754_v31  ;;  %v769_v11 = vadd.f32 %v1337_v10, %v1879_v16  ;;  %v984_v45 = vpop.f32.mrf.mxu0 }
 0x122   : > { %v763_v39 = vpop.f32.mrf.mxu1 }
 0x123   : > { %1045 = vst [vmem:[%s1890_s28 + $0x68] sm:$0xff] %v1029_v35  ;;  %v1028_v34 = vadd.f32 %v1887_v23, %v1005_v36  ;;  %v1008_v40 = vadd.f32 %v1363_v33, %v769_v11  ;;  %v764_v42 = vadd.f32 %v763_v39, %v1881_v18 }
 0x125   : > { %1044 = vst [vmem:[%s1890_s28 + $0x60] sm:$0xff] %v1028_v34  ;;  %v1031_v15 = vadd.f32 %v1887_v23, %v1008_v40  ;;  %v1007_v46 = vadd.f32 %v984_v45, %v764_v42 }
 0x127   : > { %1047 = vst [vmem:[%s1890_s28 + $0x78] sm:$0xff] %v1031_v15  ;;  %v1030_v47 = vadd.f32 %v1887_v23, %v1007_v46 }
 0x129   : > { %1046 = vst [vmem:[%s1890_s28 + $0x70] sm:$0xff] %v1030_v47 }
 0x12a   : > { %s1234_s30 = sshll.u32 %s1479_s15, 8  ;;  %s1075_s4 = sshll.u32 %s1890_s28, 4  ;;  %s1076_s4 = int_to_ptr.vmem [resolvable:$true] %s1075_s4 }
 0x12b   : > { %s1064_s7 = scalar_lea.hbm %s1977_s3, %s1234_s30  ;;  %s1489_s9 = smov 256  }
 0x12c   : > { %1369 = sst [smem:[#allocation6]] (%p1555_p5), %s1489_s9  ;;  %s1490_s8 = smov 512  }
 0x12d   : > { %1370 = sst [smem:[#allocation6 + $0x1]] (%p1555_p5), %s1490_s8  ;;  %s1491_s10 = smov 2  }
 0x12e   : > { %1371 = sst [smem:[#allocation6 + $0x2]] (%p1555_p5), %s1491_s10  ;;  %s1492_s11 = smov 128  }
 0x12f   : > { %1372 = sst [smem:[#allocation6 + $0x3]] (%p1555_p5), %s1492_s11  ;;  %s1493_s15 = smov 8  }
 0x130   : > { %1373 = sst [smem:[#allocation6 + $0x4]] (%p1555_p5), %s1492_s11  ;;  %s1494_s18 = smov 131072  }
 0x131   : > { %1374 = sst [smem:[#allocation6 + $0x5]] (%p1555_p5), %s1493_s15  ;;  %s1495_s19 = smov 0  }
 0x132   : > { %1375 = dma.general (%p1555_p5), %s1076_s4, 2048, %s1064_s7, %s1049_s29, %s1494_s18, [#allocation6], %s1495_s19, 0  }
 0x133 PF: > { %s1103_s21 = sand.u32 1, %s1467_s12   ;;  %p1378_p0 = pnand %p1173_p10, %p1566_p9 }
 0x134   : > { %s1104_s23 = scalar_lea.sflag [#allocation4], %s1103_s21 }
 0x135   : > { %p1379_p1 = pneg %p1378_p0 }
 0x137   : > { %1462 = dma.done.wait (%p1379_p1), %s1104_s23, 2048  }
 0x138   : > { %1464 = vsyncadd (%p1379_p1), %s1104_s23, 4294965248  ;;  %s16_s17 = sadd.s32 1, %s1487_s17   ;;  %s1980_s12 = smov %s1471_s13 }
 0x139   : > { %p13_p2 = scmp.ge.s32.totalorder %s16_s17, 4   ;;  %s1981_s13 = smov %s1475_s14 }
 0x13a   : > { %s1982_s14 = smov %s1564_s24  ;;  %s1983_s15 = smov %s1483_s16 }
 0x13b   : > { %s1984_s16 = smov %s1986_s20  ;;  %15 = sbr.rel (!%p13_p2) target bundleno = 4 (0x4), region = 115 }
 0x140   :  { %1109 = vsyncpa [#allocation4], 1 }
 0x141   :  { %1111 = vsyncpa [#allocation4 + $0x1], 1 }

</bundles_post_ra>
